<compile_context>
chip_gen: v7x
topology: tpu7x:2x2x1
jax: 0.10.0
libtpu: 0.0.40
codegen_flags: <defaults>
</compile_context>

<pallas_src>
import math
import functools

import jax
import jax.numpy as jnp
from jax.experimental import pallas as pl
from jax.experimental.pallas import tpu as pltpu

_LANE = 128
_LOG_2PI = math.log(2.0 * math.pi)


def _round_up(x, m):
    return ((x + m - 1) // m) * m


def _pad2(x, shape):
    """Zero-pad a 2-D array up to `shape`."""
    out = jnp.zeros(shape, x.dtype)
    return out.at[: x.shape[0], : x.shape[1]].set(x)


# --------------------------------------------------------------------------- #
# Kernel
# --------------------------------------------------------------------------- #
def _actor_kernel(s_ref, t_ref, w1s_ref, w1t_ref, b1_ref, w2_ref, b2_ref,
                  wh_ref, bh_ref, out_ref, *, a, ap, pack):
    """Fused 2-layer MLP + (mu|var) head for one batch tile.

    Inputs arrive f32 and are cast to bf16 in-kernel (the VPU cast hides under
    the matmuls); all accumulation / elementwise math is f32.
    """
    s = s_ref[...].astype(jnp.bfloat16)
    t = t_ref[...].astype(jnp.bfloat16)

    # ---- layer 1: h = relu(states @ W1s + targets @ W1t + b1) ------------- #
    h = (jnp.dot(s, w1s_ref[...], preferred_element_type=jnp.float32)
         + jnp.dot(t, w1t_ref[...], preferred_element_type=jnp.float32)
         + b1_ref[...])                                          # [bm, Hp] f32
    h = jnp.maximum(h, 0.0).astype(jnp.bfloat16)

    # ---- layer 2 ----------------------------------------------------------- #
    h = (jnp.dot(h, w2_ref[...], preferred_element_type=jnp.float32)
         + b2_ref[...])                                          # [bm, Hp] f32
    h = jnp.maximum(h, 0.0).astype(jnp.bfloat16)

    # ---- head -------------------------------------------------------------- #
    head = (jnp.dot(h, wh_ref[...], preferred_element_type=jnp.float32)
            + bh_ref[...])

    if pack:
        # Head columns were laid out as [mu_pre | var_pre | var_pre | 0...]
        # (each `a` lanes wide), so mu / log_probs / var are computed in-lane
        # and a single lane-dense (bm, 128) store suffices — no concatenate,
        # no lane shuffles.
        mu = jnp.tanh(head)
        # single-path numerically-stable softplus
        var = jnp.maximum(head, 0.0) + jnp.log1p(jnp.exp(-jnp.abs(head)))
        logp = -0.5 * (_LOG_2PI + jnp.log(var))
        lane = jax.lax.broadcasted_iota(jnp.int32, head.shape, 1)
        out_ref[...] = jnp.where(lane < a, mu,
                                 jnp.where(lane < 2 * a, logp, var))
    else:
        # General case: head = [mu_pre | var_pre], each Ap lanes wide; three
        # direct lane-aligned slice stores (no concatenate temporary).
        mu_pre = head[:, :ap]
        var_pre = head[:, ap:]
        mu = jnp.tanh(mu_pre)
        var = jnp.maximum(var_pre, 0.0) + jnp.log1p(jnp.exp(-jnp.abs(var_pre)))
        logp = -0.5 * (_LOG_2PI + jnp.log(var))
        out_ref[:, :ap] = mu
        out_ref[:, ap:2 * ap] = logp
        out_ref[:, 2 * ap:] = var


# --------------------------------------------------------------------------- #
# Parameter prep (pad + fuse + cast)
# --------------------------------------------------------------------------- #
def prepare_params(p):
    """Pad to lane-aligned shapes, split W1, fuse/pack the heads, cast bf16."""
    two_s, H = p["w1"].shape
    S = two_s // 2
    A = p["wmu"].shape[1]
    Hp = _round_up(H, _LANE)
    Ap = _round_up(A, _LANE)
    pack = (3 * A) <= Ap          # all three outputs fit in one 128-lane block

    w1 = _pad2(p["w1"], (2 * S, Hp))
    w1s = w1[:S].astype(jnp.bfloat16)                         # [S, Hp]
    w1t = w1[S:].astype(jnp.bfloat16)                         # [S, Hp]
    b1 = _pad2(p["b1"], (1, Hp))                              # f32
    w2 = _pad2(p["w2"], (Hp, Hp)).astype(jnp.bfloat16)
    b2 = _pad2(p["b2"], (1, Hp))                              # f32

    if pack:
        # Packed head: columns [0:A)=Wmu, [A:2A)=Wvar (drives log_probs),
        # [2A:3A)=Wvar again (drives var) — outputs land in-lane in one block.
        wh = (jnp.zeros((Hp, Ap), jnp.float32)
              .at[:H, :A].set(p["wmu"])
              .at[:H, A:2 * A].set(p["wvar"])
              .at[:H, 2 * A:3 * A].set(p["wvar"])
              .astype(jnp.bfloat16))                          # [Hp, Ap]
        bh = (jnp.zeros((1, Ap), jnp.float32)
              .at[:, :A].set(p["bmu"])
              .at[:, A:2 * A].set(p["bvar"])
              .at[:, 2 * A:3 * A].set(p["bvar"]))             # f32
    else:
        wh = (jnp.zeros((Hp, 2 * Ap), jnp.float32)
              .at[:H, :A].set(p["wmu"])
              .at[:H, Ap:Ap + A].set(p["wvar"])
              .astype(jnp.bfloat16))                          # [Hp, 2*Ap]
        bh = (jnp.zeros((1, 2 * Ap), jnp.float32)
              .at[:, :A].set(p["bmu"])
              .at[:, Ap:Ap + A].set(p["bvar"]))               # f32

    return dict(w1s=w1s, w1t=w1t, b1=b1, w2=w2, b2=b2, wh=wh, bh=bh,
                S=S, A=A, Hp=Hp, Ap=Ap, pack=pack)


# --------------------------------------------------------------------------- #
# Batch-tile selection (generation-aware)
# --------------------------------------------------------------------------- #
def _num_tensorcores_per_chip():
    """v7x exposes 2 TensorCores per chip; v5e/v6e have 1."""
    try:
        kind = jax.devices()[0].device_kind.lower()
    except Exception:
        return 1
    return 2 if "v7" in kind else 1


def _pick_bm(B):
    """One big 16-aligned tile on single-TC chips; an even, balanced >=2-step
    grid only on dual-TC v7x."""
    cap = 512
    Bp = _round_up(B, 16)
    if _num_tensorcores_per_chip() > 1 and B >= 32:
        n_tiles = 2 * max(1, pl.cdiv(Bp, 2 * cap))   # even number of tiles
        return _round_up(pl.cdiv(B, n_tiles), 16)
    return min(cap, Bp)


# --------------------------------------------------------------------------- #
# Wrapper
# --------------------------------------------------------------------------- #
def _weight_spec(shape, index_map, buffered):
    """Grid-invariant operand: single-buffer it (no pointless double-buffer)."""
    if buffered:
        return pl.BlockSpec(shape, index_map,
                            pipeline_mode=pl.Buffered(buffer_count=1))
    return pl.BlockSpec(shape, index_map)


@functools.partial(jax.jit, static_argnames=("a", "pack", "bm", "buffered"))
def _actor_call(states, targets, w1s, w1t, b1, w2, b2, wh, bh,
                *, a, pack, bm, buffered):
    B, S = states.shape
    Hp = w2.shape[0]
    head_w = wh.shape[1]
    ap = head_w if pack else head_w // 2
    out_w = ap if pack else 3 * ap

    grid = (pl.cdiv(B, bm),)
    batched = lambda i: (i, 0)
    full = lambda i: (0, 0)

    kern = functools.partial(_actor_kernel, a=a, ap=ap, pack=pack)

    in_specs = [
        pl.BlockSpec((bm, S), batched),                 # states  (f32)
        pl.BlockSpec((bm, S), batched),                 # targets (f32)
        _weight_spec((S, Hp), full, buffered),          # w1s
        _weight_spec((S, Hp), full, buffered),          # w1t
        _weight_spec((1, Hp), full, buffered),          # b1
        _weight_spec((Hp, Hp), full, buffered),         # w2
        _weight_spec((1, Hp), full, buffered),          # b2
        _weight_spec((Hp, head_w), full, buffered),     # fused head W
        _weight_spec((1, head_w), full, buffered),      # fused head b
    ]

    flops = 2 * B * (2 * S * Hp + Hp * Hp + Hp * head_w)
    transcendentals = 4 * B * ap                        # tanh, exp, log1p, log
    bytes_accessed = (2 * B * S * 4                                  # inputs
                      + (2 * S * Hp + Hp * Hp + Hp * head_w) * 2     # bf16 W
                      + (2 * Hp + head_w) * 4                        # f32 b
                      + B * out_w * 4)                               # output

    return pl.pallas_call(
        kern,
        out_shape=jax.ShapeDtypeStruct((B, out_w), jnp.float32),
        grid_spec=pltpu.PrefetchScalarGridSpec(
            num_scalar_prefetch=0,
            grid=grid,
            in_specs=in_specs,
            out_specs=pl.BlockSpec((bm, out_w), batched),
        ),
        compiler_params=pltpu.CompilerParams(
            dimension_semantics=("parallel",)),
        cost_estimate=pl.CostEstimate(flops=flops,
                                      transcendentals=transcendentals,
                                      bytes_accessed=bytes_accessed),
    )(states, targets, w1s, w1t, b1, w2, b2, wh, bh)


def hrl_actor_forward(states, targets, kparams, *, bm=None):
    """HRLLayer.forward: (states, targets) -> (actions, log_probs, var)."""
    B = states.shape[0]
    if bm is None:
        bm = _pick_bm(B)
    A, Ap, pack = kparams["A"], kparams["Ap"], kparams["pack"]
    args = (states, targets, kparams["w1s"], kparams["w1t"], kparams["b1"],
            kparams["w2"], kparams["b2"], kparams["wh"], kparams["bh"])
    try:
        slab = _actor_call(*args, a=A, pack=pack, bm=bm, buffered=True)
    except Exception:
        # Fallback if this JAX build rejects pipeline_mode=pl.Buffered(1).
        slab = _actor_call(*args, a=A, pack=pack, bm=bm, buffered=False)
    if pack:
        return slab[:, :A], slab[:, A:2 * A], slab[:, 2 * A:3 * A]
    return slab[:, :A], slab[:, Ap:Ap + A], slab[:, 2 * Ap:2 * Ap + A]


# --------------------------------------------------------------------------- #
# Init + pure-JAX reference
# --------------------------------------------------------------------------- #
def init_params(key, state_size, action_size, n_embed):
    """Deterministic synthetic init (PyTorch-Linear-style uniform), f32."""
    in_dim = state_size * 2
    ks = jax.random.split(key, 8)

    def lin(kw, kb, fan_in, fan_out):
        bound = 1.0 / math.sqrt(fan_in)
        w = jax.random.uniform(kw, (fan_in, fan_out), jnp.float32, -bound, bound)
        b = jax.random.uniform(kb, (1, fan_out), jnp.float32, -bound, bound)
        return w, b

    w1, b1 = lin(ks[0], ks[1], in_dim, n_embed)
    w2, b2 = lin(ks[2], ks[3], n_embed, n_embed)
    wmu, bmu = lin(ks[4], ks[5], n_embed, action_size)
    wvar, bvar = lin(ks[6], ks[7], n_embed, action_size)
    return dict(w1=w1, b1=b1, w2=w2, b2=b2,
                wmu=wmu, bmu=bmu, wvar=wvar, bvar=bvar)


def _reference(states, targets, p):
    """Pure-JAX reference using the same bf16-matmul / f32-accumulate recipe."""
    bf = jnp.bfloat16
    S = states.shape[-1]
    w1 = p["w1"].astype(bf)
    h = (jnp.dot(states.astype(bf), w1[:S], preferred_element_type=jnp.float32)
         + jnp.dot(targets.astype(bf), w1[S:], preferred_element_type=jnp.float32)
         + p["b1"])
    h = jnp.maximum(h, 0.0).astype(bf)
    h = jnp.dot(h, p["w2"].astype(bf), preferred_element_type=jnp.float32) + p["b2"]
    h = jnp.maximum(h, 0.0).astype(bf)
    mu = jnp.tanh(
        jnp.dot(h, p["wmu"].astype(bf), preferred_element_type=jnp.float32)
        + p["bmu"])
    pre = (jnp.dot(h, p["wvar"].astype(bf), preferred_element_type=jnp.float32)
           + p["bvar"])
    var = jnp.maximum(pre, 0.0) + jnp.log1p(jnp.exp(-jnp.abs(pre)))
    logp = -0.5 * (_LOG_2PI + jnp.log(var))
    return mu, logp, var


if __name__ == "__main__":
    # Small, module-consistent shapes.
    B = 16           # batch (multiple of 16 -> exact single tile)
    STATE_SIZE = 16
    ACTION_SIZE = 4
    N_EMBED = 32     # scaled-down from the default 400

    key = jax.random.PRNGKey(0)
    k_s, k_t, k_p = jax.random.split(key, 3)
    states = jax.random.normal(k_s, (B, STATE_SIZE), jnp.float32)
    targets = jax.random.normal(k_t, (B, STATE_SIZE), jnp.float32)
    params = init_params(k_p, STATE_SIZE, ACTION_SIZE, N_EMBED)
    kparams = prepare_params(params)

    actions, log_probs, var = hrl_actor_forward(states, targets, kparams)
    jax.block_until_ready((actions, log_probs, var))

    ref_a, ref_lp, ref_v = _reference(states, targets, params)
    assert jnp.allclose(actions, ref_a, atol=1e-4, rtol=1e-4), "actions mismatch"
    assert jnp.allclose(log_probs, ref_lp, atol=1e-4, rtol=1e-4), "log_probs mismatch"
    assert jnp.allclose(var, ref_v, atol=1e-4, rtol=1e-4), "var mismatch"

    print("KERNEL_OK")
</pallas_src>

<mosaic_0001>
module attributes {stable_mosaic.version = 11 : i64} {
  func.func @_actor_kernel(%arg0: i32, %arg1: memref<16x16xf32, #tpu.memory_space<vmem>>, %arg2: memref<16x16xf32, #tpu.memory_space<vmem>>, %arg3: memref<16x128xbf16, #tpu.memory_space<vmem>>, %arg4: memref<16x128xbf16, #tpu.memory_space<vmem>>, %arg5: memref<1x128xf32, #tpu.memory_space<vmem>>, %arg6: memref<128x128xbf16, #tpu.memory_space<vmem>>, %arg7: memref<1x128xf32, #tpu.memory_space<vmem>>, %arg8: memref<128x128xbf16, #tpu.memory_space<vmem>>, %arg9: memref<1x128xf32, #tpu.memory_space<vmem>>, %arg10: memref<16x128xf32, #tpu.memory_space<vmem>>) attributes {dimension_semantics = [#tpu.dimension_semantics<parallel>], iteration_bounds = array<i64: 1>, scalar_prefetch = 0 : i64, scratch_operands = 0 : i64, tpu.core_type = #tpu.core_type<tc>, window_params = [{transform_indices = @transform_0, window_bounds = array<i64: 16, 16>}, {transform_indices = @transform_1, window_bounds = array<i64: 16, 16>}, {pipeline_mode = #tpu.pipeline_mode<synchronous>, transform_indices = @transform_2, window_bounds = array<i64: 16, 128>}, {pipeline_mode = #tpu.pipeline_mode<synchronous>, transform_indices = @transform_3, window_bounds = array<i64: 16, 128>}, {pipeline_mode = #tpu.pipeline_mode<synchronous>, transform_indices = @transform_4, window_bounds = array<i64: 1, 128>}, {pipeline_mode = #tpu.pipeline_mode<synchronous>, transform_indices = @transform_5, window_bounds = array<i64: 128, 128>}, {pipeline_mode = #tpu.pipeline_mode<synchronous>, transform_indices = @transform_6, window_bounds = array<i64: 1, 128>}, {pipeline_mode = #tpu.pipeline_mode<synchronous>, transform_indices = @transform_7, window_bounds = array<i64: 128, 128>}, {pipeline_mode = #tpu.pipeline_mode<synchronous>, transform_indices = @transform_8, window_bounds = array<i64: 1, 128>}, {transform_indices = @transform_9, window_bounds = array<i64: 16, 128>}]} {
    %c0 = arith.constant 0 : index
    %c0_0 = arith.constant 0 : index
    %0 = vector.load %arg1[%c0, %c0_0] : memref<16x16xf32, #tpu.memory_space<vmem>>, vector<16x16xf32>
    %1 = arith.truncf %0 : vector<16x16xf32> to vector<16x16xbf16>
    %c0_1 = arith.constant 0 : index
    %c0_2 = arith.constant 0 : index
    %2 = vector.load %arg2[%c0_1, %c0_2] : memref<16x16xf32, #tpu.memory_space<vmem>>, vector<16x16xf32>
    %3 = arith.truncf %2 : vector<16x16xf32> to vector<16x16xbf16>
    %c0_3 = arith.constant 0 : index
    %c0_4 = arith.constant 0 : index
    %4 = vector.load %arg3[%c0_3, %c0_4] : memref<16x128xbf16, #tpu.memory_space<vmem>>, vector<16x128xbf16>
    %cst = arith.constant dense<0.000000e+00> : vector<16x128xf32>
    %5 = tpu.matmul %1, %4, %cst {dimension_numbers = #tpu.dot_dimension_numbers<[1], [0], [0], [1], [0, 0, 1, 1], [], []>} : vector<16x16xbf16>, vector<16x128xbf16>, vector<16x128xf32> -> vector<16x128xf32>
    %c0_5 = arith.constant 0 : index
    %c0_6 = arith.constant 0 : index
    %6 = vector.load %arg4[%c0_5, %c0_6] : memref<16x128xbf16, #tpu.memory_space<vmem>>, vector<16x128xbf16>
    %cst_7 = arith.constant dense<0.000000e+00> : vector<16x128xf32>
    %7 = tpu.matmul %3, %6, %cst_7 {dimension_numbers = #tpu.dot_dimension_numbers<[1], [0], [0], [1], [0, 0, 1, 1], [], []>} : vector<16x16xbf16>, vector<16x128xbf16>, vector<16x128xf32> -> vector<16x128xf32>
    %8 = arith.addf %5, %7 : vector<16x128xf32>
    %c0_8 = arith.constant 0 : index
    %c0_9 = arith.constant 0 : index
    %9 = vector.load %arg5[%c0_8, %c0_9] : memref<1x128xf32, #tpu.memory_space<vmem>>, vector<1x128xf32>
    %10 = vector.broadcast %9 : vector<1x128xf32> to vector<16x128xf32>
    %11 = arith.addf %8, %10 : vector<16x128xf32>
    %cst_10 = arith.constant 0.000000e+00 : f32
    %12 = vector.broadcast %cst_10 : f32 to vector<16x128xf32>
    %13 = arith.maximumf %11, %12 : vector<16x128xf32>
    %14 = arith.truncf %13 : vector<16x128xf32> to vector<16x128xbf16>
    %c0_11 = arith.constant 0 : index
    %c0_12 = arith.constant 0 : index
    %15 = vector.load %arg6[%c0_11, %c0_12] : memref<128x128xbf16, #tpu.memory_space<vmem>>, vector<128x128xbf16>
    %cst_13 = arith.constant dense<0.000000e+00> : vector<16x128xf32>
    %16 = tpu.matmul %14, %15, %cst_13 {dimension_numbers = #tpu.dot_dimension_numbers<[1], [0], [0], [1], [0, 0, 1, 1], [], []>} : vector<16x128xbf16>, vector<128x128xbf16>, vector<16x128xf32> -> vector<16x128xf32>
    %c0_14 = arith.constant 0 : index
    %c0_15 = arith.constant 0 : index
    %17 = vector.load %arg7[%c0_14, %c0_15] : memref<1x128xf32, #tpu.memory_space<vmem>>, vector<1x128xf32>
    %18 = vector.broadcast %17 : vector<1x128xf32> to vector<16x128xf32>
    %19 = arith.addf %16, %18 : vector<16x128xf32>
    %cst_16 = arith.constant 0.000000e+00 : f32
    %20 = vector.broadcast %cst_16 : f32 to vector<16x128xf32>
    %21 = arith.maximumf %19, %20 : vector<16x128xf32>
    %22 = arith.truncf %21 : vector<16x128xf32> to vector<16x128xbf16>
    %c0_17 = arith.constant 0 : index
    %c0_18 = arith.constant 0 : index
    %23 = vector.load %arg8[%c0_17, %c0_18] : memref<128x128xbf16, #tpu.memory_space<vmem>>, vector<128x128xbf16>
    %cst_19 = arith.constant dense<0.000000e+00> : vector<16x128xf32>
    %24 = tpu.matmul %22, %23, %cst_19 {dimension_numbers = #tpu.dot_dimension_numbers<[1], [0], [0], [1], [0, 0, 1, 1], [], []>} : vector<16x128xbf16>, vector<128x128xbf16>, vector<16x128xf32> -> vector<16x128xf32>
    %c0_20 = arith.constant 0 : index
    %c0_21 = arith.constant 0 : index
    %25 = vector.load %arg9[%c0_20, %c0_21] : memref<1x128xf32, #tpu.memory_space<vmem>>, vector<1x128xf32>
    %26 = vector.broadcast %25 : vector<1x128xf32> to vector<16x128xf32>
    %27 = arith.addf %24, %26 : vector<16x128xf32>
    %28 = math.tanh %27 : vector<16x128xf32>
    %cst_22 = arith.constant 0.000000e+00 : f32
    %29 = vector.broadcast %cst_22 : f32 to vector<16x128xf32>
    %30 = arith.maximumf %27, %29 : vector<16x128xf32>
    %31 = math.absf %27 : vector<16x128xf32>
    %cst_23 = arith.constant 0.000000e+00 : f32
    %32 = vector.broadcast %cst_23 : f32 to vector<16x128xf32>
    %33 = arith.subf %32, %31 : vector<16x128xf32>
    %34 = math.exp %33 : vector<16x128xf32>
    %35 = math.log1p %34 : vector<16x128xf32>
    %36 = arith.addf %30, %35 : vector<16x128xf32>
    %37 = math.log %36 : vector<16x128xf32>
    %cst_24 = arith.constant 1.83787704 : f32
    %38 = vector.broadcast %cst_24 : f32 to vector<16x128xf32>
    %39 = arith.addf %38, %37 : vector<16x128xf32>
    %cst_25 = arith.constant -5.000000e-01 : f32
    %40 = vector.broadcast %cst_25 : f32 to vector<16x128xf32>
    %41 = arith.mulf %40, %39 : vector<16x128xf32>
    %42 = tpu.iota {dimensions = array<i32: 1>} : vector<16x128xi32>
    %c4_i32 = arith.constant 4 : i32
    %43 = vector.broadcast %c4_i32 : i32 to vector<16x128xi32>
    %44 = arith.cmpi slt, %42, %43 : vector<16x128xi32>
    %c8_i32 = arith.constant 8 : i32
    %45 = vector.broadcast %c8_i32 : i32 to vector<16x128xi32>
    %46 = arith.cmpi slt, %42, %45 : vector<16x128xi32>
    %47 = arith.select %46, %41, %36 : vector<16x128xi1>, vector<16x128xf32>
    %48 = arith.select %44, %28, %47 : vector<16x128xi1>, vector<16x128xf32>
    %c0_26 = arith.constant 0 : index
    %c0_27 = arith.constant 0 : index
    %49 = vector.load %arg10[%c0_26, %c0_27] : memref<16x128xf32, #tpu.memory_space<vmem>>, vector<16x128xf32>
    tpu.vector_store %arg10[%c0_26, %c0_27], %48 {strides = array<i32>} : memref<16x128xf32, #tpu.memory_space<vmem>>, vector<16x128xf32>,
    return
  }
  func.func @transform_0(%arg0: i32) -> (i32, i32) {
    %c0_i32 = arith.constant 0 : i32
    %c0_i32_0 = arith.constant 0 : i32
    return %arg0, %c0_i32 : i32, i32
  }
  func.func @transform_1(%arg0: i32) -> (i32, i32) {
    %c0_i32 = arith.constant 0 : i32
    %c0_i32_0 = arith.constant 0 : i32
    return %arg0, %c0_i32 : i32, i32
  }
  func.func @transform_2(%arg0: i32) -> (i32, i32) {
    %c0_i32 = arith.constant 0 : i32
    %c0_i32_0 = arith.constant 0 : i32
    %c0_i32_1 = arith.constant 0 : i32
    return %c0_i32, %c0_i32_0 : i32, i32
  }
  func.func @transform_3(%arg0: i32) -> (i32, i32) {
    %c0_i32 = arith.constant 0 : i32
    %c0_i32_0 = arith.constant 0 : i32
    %c0_i32_1 = arith.constant 0 : i32
    return %c0_i32, %c0_i32_0 : i32, i32
  }
  func.func @transform_4(%arg0: i32) -> (i32, i32) {
    %c0_i32 = arith.constant 0 : i32
    %c0_i32_0 = arith.constant 0 : i32
    %c0_i32_1 = arith.constant 0 : i32
    return %c0_i32, %c0_i32_0 : i32, i32
  }
  func.func @transform_5(%arg0: i32) -> (i32, i32) {
    %c0_i32 = arith.constant 0 : i32
    %c0_i32_0 = arith.constant 0 : i32
    %c0_i32_1 = arith.constant 0 : i32
    return %c0_i32, %c0_i32_0 : i32, i32
  }
  func.func @transform_6(%arg0: i32) -> (i32, i32) {
    %c0_i32 = arith.constant 0 : i32
    %c0_i32_0 = arith.constant 0 : i32
    %c0_i32_1 = arith.constant 0 : i32
    return %c0_i32, %c0_i32_0 : i32, i32
  }
  func.func @transform_7(%arg0: i32) -> (i32, i32) {
    %c0_i32 = arith.constant 0 : i32
    %c0_i32_0 = arith.constant 0 : i32
    %c0_i32_1 = arith.constant 0 : i32
    return %c0_i32, %c0_i32_0 : i32, i32
  }
  func.func @transform_8(%arg0: i32) -> (i32, i32) {
    %c0_i32 = arith.constant 0 : i32
    %c0_i32_0 = arith.constant 0 : i32
    %c0_i32_1 = arith.constant 0 : i32
    return %c0_i32, %c0_i32_0 : i32, i32
  }
  func.func @transform_9(%arg0: i32) -> (i32, i32) {
    %c0_i32 = arith.constant 0 : i32
    %c0_i32_0 = arith.constant 0 : i32
    return %arg0, %c0_i32 : i32, i32
  }
}

module attributes {stable_mosaic.version = 11 : i64} {
  func.func @_actor_kernel(%arg0: i32, %arg1: memref<16x16xf32, #tpu.memory_space<vmem>>, %arg2: memref<16x16xf32, #tpu.memory_space<vmem>>, %arg3: memref<16x128xbf16, #tpu.memory_space<vmem>>, %arg4: memref<16x128xbf16, #tpu.memory_space<vmem>>, %arg5: memref<1x128xf32, #tpu.memory_space<vmem>>, %arg6: memref<128x128xbf16, #tpu.memory_space<vmem>>, %arg7: memref<1x128xf32, #tpu.memory_space<vmem>>, %arg8: memref<128x128xbf16, #tpu.memory_space<vmem>>, %arg9: memref<1x128xf32, #tpu.memory_space<vmem>>, %arg10: memref<16x128xf32, #tpu.memory_space<vmem>>) attributes {dimension_semantics = [#tpu.dimension_semantics<parallel>], iteration_bounds = array<i64: 1>, scalar_prefetch = 0 : i64, scratch_operands = 0 : i64, tpu.core_type = #tpu.core_type<tc>, window_params = [{transform_indices = @transform_0, window_bounds = array<i64: 16, 16>}, {transform_indices = @transform_1, window_bounds = array<i64: 16, 16>}, {pipeline_mode = #tpu.pipeline_mode<synchronous>, transform_indices = @transform_2, window_bounds = array<i64: 16, 128>}, {pipeline_mode = #tpu.pipeline_mode<synchronous>, transform_indices = @transform_3, window_bounds = array<i64: 16, 128>}, {pipeline_mode = #tpu.pipeline_mode<synchronous>, transform_indices = @transform_4, window_bounds = array<i64: 1, 128>}, {pipeline_mode = #tpu.pipeline_mode<synchronous>, transform_indices = @transform_5, window_bounds = array<i64: 128, 128>}, {pipeline_mode = #tpu.pipeline_mode<synchronous>, transform_indices = @transform_6, window_bounds = array<i64: 1, 128>}, {pipeline_mode = #tpu.pipeline_mode<synchronous>, transform_indices = @transform_7, window_bounds = array<i64: 128, 128>}, {pipeline_mode = #tpu.pipeline_mode<synchronous>, transform_indices = @transform_8, window_bounds = array<i64: 1, 128>}, {transform_indices = @transform_9, window_bounds = array<i64: 16, 128>}]} {
    %c0 = arith.constant 0 : index
    %c0_0 = arith.constant 0 : index
    %0 = vector.load %arg1[%c0, %c0_0] : memref<16x16xf32, #tpu.memory_space<vmem>>, vector<16x16xf32>
    %1 = arith.truncf %0 : vector<16x16xf32> to vector<16x16xbf16>
    %c0_1 = arith.constant 0 : index
    %c0_2 = arith.constant 0 : index
    %2 = vector.load %arg2[%c0_1, %c0_2] : memref<16x16xf32, #tpu.memory_space<vmem>>, vector<16x16xf32>
    %3 = arith.truncf %2 : vector<16x16xf32> to vector<16x16xbf16>
    %c0_3 = arith.constant 0 : index
    %c0_4 = arith.constant 0 : index
    %4 = vector.load %arg3[%c0_3, %c0_4] : memref<16x128xbf16, #tpu.memory_space<vmem>>, vector<16x128xbf16>
    %cst = arith.constant dense<0.000000e+00> : vector<16x128xf32>
    %5 = tpu.matmul %1, %4, %cst {dimension_numbers = #tpu.dot_dimension_numbers<[1], [0], [0], [1], [0, 0, 1, 1], [], []>} : vector<16x16xbf16>, vector<16x128xbf16>, vector<16x128xf32> -> vector<16x128xf32>
    %c0_5 = arith.constant 0 : index
    %c0_6 = arith.constant 0 : index
    %6 = vector.load %arg4[%c0_5, %c0_6] : memref<16x128xbf16, #tpu.memory_space<vmem>>, vector<16x128xbf16>
    %cst_7 = arith.constant dense<0.000000e+00> : vector<16x128xf32>
    %7 = tpu.matmul %3, %6, %cst_7 {dimension_numbers = #tpu.dot_dimension_numbers<[1], [0], [0], [1], [0, 0, 1, 1], [], []>} : vector<16x16xbf16>, vector<16x128xbf16>, vector<16x128xf32> -> vector<16x128xf32>
    %8 = arith.addf %5, %7 : vector<16x128xf32>
    %c0_8 = arith.constant 0 : index
    %c0_9 = arith.constant 0 : index
    %9 = vector.load %arg5[%c0_8, %c0_9] : memref<1x128xf32, #tpu.memory_space<vmem>>, vector<1x128xf32>
    %10 = vector.broadcast %9 : vector<1x128xf32> to vector<16x128xf32>
    %11 = arith.addf %8, %10 : vector<16x128xf32>
    %cst_10 = arith.constant 0.000000e+00 : f32
    %12 = vector.broadcast %cst_10 : f32 to vector<16x128xf32>
    %13 = arith.maximumf %11, %12 : vector<16x128xf32>
    %14 = arith.truncf %13 : vector<16x128xf32> to vector<16x128xbf16>
    %c0_11 = arith.constant 0 : index
    %c0_12 = arith.constant 0 : index
    %15 = vector.load %arg6[%c0_11, %c0_12] : memref<128x128xbf16, #tpu.memory_space<vmem>>, vector<128x128xbf16>
    %cst_13 = arith.constant dense<0.000000e+00> : vector<16x128xf32>
    %16 = tpu.matmul %14, %15, %cst_13 {dimension_numbers = #tpu.dot_dimension_numbers<[1], [0], [0], [1], [0, 0, 1, 1], [], []>} : vector<16x128xbf16>, vector<128x128xbf16>, vector<16x128xf32> -> vector<16x128xf32>
    %c0_14 = arith.constant 0 : index
    %c0_15 = arith.constant 0 : index
    %17 = vector.load %arg7[%c0_14, %c0_15] : memref<1x128xf32, #tpu.memory_space<vmem>>, vector<1x128xf32>
    %18 = vector.broadcast %17 : vector<1x128xf32> to vector<16x128xf32>
    %19 = arith.addf %16, %18 : vector<16x128xf32>
    %cst_16 = arith.constant 0.000000e+00 : f32
    %20 = vector.broadcast %cst_16 : f32 to vector<16x128xf32>
    %21 = arith.maximumf %19, %20 : vector<16x128xf32>
    %22 = arith.truncf %21 : vector<16x128xf32> to vector<16x128xbf16>
    %c0_17 = arith.constant 0 : index
    %c0_18 = arith.constant 0 : index
    %23 = vector.load %arg8[%c0_17, %c0_18] : memref<128x128xbf16, #tpu.memory_space<vmem>>, vector<128x128xbf16>
    %cst_19 = arith.constant dense<0.000000e+00> : vector<16x128xf32>
    %24 = tpu.matmul %22, %23, %cst_19 {dimension_numbers = #tpu.dot_dimension_numbers<[1], [0], [0], [1], [0, 0, 1, 1], [], []>} : vector<16x128xbf16>, vector<128x128xbf16>, vector<16x128xf32> -> vector<16x128xf32>
    %c0_20 = arith.constant 0 : index
    %c0_21 = arith.constant 0 : index
    %25 = vector.load %arg9[%c0_20, %c0_21] : memref<1x128xf32, #tpu.memory_space<vmem>>, vector<1x128xf32>
    %26 = vector.broadcast %25 : vector<1x128xf32> to vector<16x128xf32>
    %27 = arith.addf %24, %26 : vector<16x128xf32>
    %28 = math.tanh %27 : vector<16x128xf32>
    %cst_22 = arith.constant 0.000000e+00 : f32
    %29 = vector.broadcast %cst_22 : f32 to vector<16x128xf32>
    %30 = arith.maximumf %27, %29 : vector<16x128xf32>
    %31 = math.absf %27 : vector<16x128xf32>
    %cst_23 = arith.constant 0.000000e+00 : f32
    %32 = vector.broadcast %cst_23 : f32 to vector<16x128xf32>
    %33 = arith.subf %32, %31 : vector<16x128xf32>
    %34 = math.exp %33 : vector<16x128xf32>
    %35 = math.log1p %34 : vector<16x128xf32>
    %36 = arith.addf %30, %35 : vector<16x128xf32>
    %37 = math.log %36 : vector<16x128xf32>
    %cst_24 = arith.constant 1.83787704 : f32
    %38 = vector.broadcast %cst_24 : f32 to vector<16x128xf32>
    %39 = arith.addf %38, %37 : vector<16x128xf32>
    %cst_25 = arith.constant -5.000000e-01 : f32
    %40 = vector.broadcast %cst_25 : f32 to vector<16x128xf32>
    %41 = arith.mulf %40, %39 : vector<16x128xf32>
    %42 = tpu.iota {dimensions = array<i32: 1>} : vector<16x128xi32>
    %c4_i32 = arith.constant 4 : i32
    %43 = vector.broadcast %c4_i32 : i32 to vector<16x128xi32>
    %44 = arith.cmpi slt, %42, %43 : vector<16x128xi32>
    %c8_i32 = arith.constant 8 : i32
    %45 = vector.broadcast %c8_i32 : i32 to vector<16x128xi32>
    %46 = arith.cmpi slt, %42, %45 : vector<16x128xi32>
    %47 = arith.select %46, %41, %36 : vector<16x128xi1>, vector<16x128xf32>
    %48 = arith.select %44, %28, %47 : vector<16x128xi1>, vector<16x128xf32>
    %c0_26 = arith.constant 0 : index
    %c0_27 = arith.constant 0 : index
    %49 = vector.load %arg10[%c0_26, %c0_27] : memref<16x128xf32, #tpu.memory_space<vmem>>, vector<16x128xf32>
    tpu.vector_store %arg10[%c0_26, %c0_27], %48 {strides = array<i32>} : memref<16x128xf32, #tpu.memory_space<vmem>>, vector<16x128xf32>,
    return
  }
  func.func @transform_0(%arg0: i32) -> (i32, i32) {
    %c0_i32 = arith.constant 0 : i32
    %c0_i32_0 = arith.constant 0 : i32
    return %arg0, %c0_i32 : i32, i32
  }
  func.func @transform_1(%arg0: i32) -> (i32, i32) {
    %c0_i32 = arith.constant 0 : i32
    %c0_i32_0 = arith.constant 0 : i32
    return %arg0, %c0_i32 : i32, i32
  }
  func.func @transform_2(%arg0: i32) -> (i32, i32) {
    %c0_i32 = arith.constant 0 : i32
    %c0_i32_0 = arith.constant 0 : i32
    %c0_i32_1 = arith.constant 0 : i32
    return %c0_i32, %c0_i32_0 : i32, i32
  }
  func.func @transform_3(%arg0: i32) -> (i32, i32) {
    %c0_i32 = arith.constant 0 : i32
    %c0_i32_0 = arith.constant 0 : i32
    %c0_i32_1 = arith.constant 0 : i32
    return %c0_i32, %c0_i32_0 : i32, i32
  }
  func.func @transform_4(%arg0: i32) -> (i32, i32) {
    %c0_i32 = arith.constant 0 : i32
    %c0_i32_0 = arith.constant 0 : i32
    %c0_i32_1 = arith.constant 0 : i32
    return %c0_i32, %c0_i32_0 : i32, i32
  }
  func.func @transform_5(%arg0: i32) -> (i32, i32) {
    %c0_i32 = arith.constant 0 : i32
    %c0_i32_0 = arith.constant 0 : i32
    %c0_i32_1 = arith.constant 0 : i32
    return %c0_i32, %c0_i32_0 : i32, i32
  }
  func.func @transform_6(%arg0: i32) -> (i32, i32) {
    %c0_i32 = arith.constant 0 : i32
    %c0_i32_0 = arith.constant 0 : i32
    %c0_i32_1 = arith.constant 0 : i32
    return %c0_i32, %c0_i32_0 : i32, i32
  }
  func.func @transform_7(%arg0: i32) -> (i32, i32) {
    %c0_i32 = arith.constant 0 : i32
    %c0_i32_0 = arith.constant 0 : i32
    %c0_i32_1 = arith.constant 0 : i32
    return %c0_i32, %c0_i32_0 : i32, i32
  }
  func.func @transform_8(%arg0: i32) -> (i32, i32) {
    %c0_i32 = arith.constant 0 : i32
    %c0_i32_0 = arith.constant 0 : i32
    %c0_i32_1 = arith.constant 0 : i32
    return %c0_i32, %c0_i32_0 : i32, i32
  }
  func.func @transform_9(%arg0: i32) -> (i32, i32) {
    %c0_i32 = arith.constant 0 : i32
    %c0_i32_0 = arith.constant 0 : i32
    return %arg0, %c0_i32 : i32, i32
  }
}

</mosaic_0001>

<bundles_post_ra>
// kernel: _actor_call.1
= control target key start
LH: loop header
LB: loop body
LE: loop exit
PB: predicated region body
PF: predicated region fallthrough
CT: control target
= control target key end

     0   :  { %14 = vsyncpa [#allocation3], 0  ;;  %s994_s0 = inlined_call_operand.hbm [shape: f32[16,16], index: 0, kind: input, shape index: {}]   ;;  %s995_s1 = inlined_call_operand.hbm [shape: f32[16,16], index: 1, kind: input, shape index: {}]   ;;  %s996_s2 = inlined_call_operand.hbm [shape: bf16[16,128], index: 2, kind: input, shape index: {}]   ;;  %s997_s3 = inlined_call_operand.vmem [shape: bf16[16,128], index: 3, kind: input, shape index: {}]   ;;  %s998_s4 = inlined_call_operand.vmem [shape: f32[1,128], index: 4, kind: input, shape index: {}]   ;;  %s999_s5 = inlined_call_operand.hbm [shape: bf16[128,128], index: 5, kind: input, shape index: {}]   ;;  %s1000_s6 = inlined_call_operand.vmem [shape: f32[1,128], index: 6, kind: input, shape index: {}]   ;;  %s1001_s7 = inlined_call_operand.hbm [shape: bf16[128,128], index: 7, kind: input, shape index: {}]   ;;  %s1002_s8 = inlined_call_operand.vmem [shape: f32[1,128], index: 8, kind: input, shape index: {}]   ;;  %s1003_s9 = inlined_call_operand.hbm [shape: f32[16,128], index: 9, kind: output, shape index: {}]  }
   0x1   :  { %15 = vsyncpa [#allocation6], 0 }
   0x2   :  { %16 = vsyncpa [#allocation9], 0 }
   0x3   :  { %17 = vsyncpa [#allocation4], 0  ;;  %s804_s30 = smov [#allocation5]   ;;  %s664_s13 = scalar_lea.hbm %s995_s1, 256 }
   0x4   :  { %s35_s10 = sshll.u32 %s804_s30, 4  ;;  %p665_p0 = scmp.ne.s32.totalorder %s995_s1, %s664_s13  ;;  %s36_s10 = int_to_ptr.vmem [resolvable:$true] %s35_s10 }
   0x5   :  { %p668_p1 = scmp.lt.u32.totalorder %s664_s13, %s995_s1 }
   0x7   :  { %p670_p2 = pnand %p668_p1, %p665_p0 }
   0x9   :  { %673 = shalt.err (!%p670_p2)
}
   0xa   :  { %s674_s18 = scalar_lea.vmem %s36_s10, 256  ;;  %p679_p4 = scmp.lt.s32.totalorder %s36_s10, %s36_s10 }
   0xb   :  { %p675_p3 = scmp.ne.s32.totalorder %s36_s10, %s674_s18  ;;  %p680_p5 = scmp.lt.s32.totalorder %s674_s18, %s674_s18 }
   0xd   :  { %p681_p6 = por %p680_p5, %p679_p4 }
   0xf   :  { %p682_p7 = pnand %p681_p6, %p675_p3 }
  0x11   :  { %685 = shalt.err (!%p682_p7)
}
  0x12   :  { %s805_s19 = smov 128   ;;  %s806_s20 = smov 8  }
  0x13   :  { %41 = dma.hbm_to_vmem [thread:$0]  %s995_s1, 256, %s36_s10, [#allocation6], %s805_s19, %s805_s19, %s806_s20  }
  0x14   :  { %s807_s23 = smov [#allocation8]   ;;  %s808_s25 = smov [#allocation2]  }
  0x15   :  { %s63_s24 = sshll.u32 %s807_s23, 4  ;;  %s23_s26 = sshll.u32 %s808_s25, 4  ;;  %s64_s24 = int_to_ptr.vmem [resolvable:$true] %s63_s24  ;;  %s24_s26 = int_to_ptr.vmem [resolvable:$true] %s23_s26 }
  0x16   :  { %s686_s29 = scalar_lea.hbm %s999_s5, 1024 }
  0x17   :  { %p687_p8 = scmp.ne.s32.totalorder %s999_s5, %s686_s29  ;;  %p690_p9 = scmp.lt.u32.totalorder %s686_s29, %s999_s5 }
  0x19   :  { %p692_p10 = pnand %p690_p9, %p687_p8 }
  0x1b   :  { %695 = shalt.err (!%p692_p10)
}
  0x1c   :  { %s696_s1 = scalar_lea.vmem %s64_s24, 1024  ;;  %p701_p12 = scmp.lt.s32.totalorder %s64_s24, %s64_s24 }
  0x1d   :  { %p697_p11 = scmp.ne.s32.totalorder %s64_s24, %s696_s1  ;;  %p702_p13 = scmp.lt.s32.totalorder %s696_s1, %s696_s1 }
  0x1f   :  { %p703_p0 = por %p702_p13, %p701_p12 }
  0x21   :  { %p704_p1 = pnand %p703_p0, %p697_p11 }
  0x23   :  { %707 = shalt.err (!%p704_p1)
}
  0x24   :  { %s809_s10 = smov 64   ;;  %s810_s14 = smov 4  }
  0x25   :  { %69 = dma.hbm_to_vmem [thread:$0]  %s999_s5, 1024, %s64_s24, [#allocation9], %s809_s10, %s809_s10, %s810_s14  }
  0x26   :  { %s708_s21 = scalar_lea.hbm %s994_s0, 256 }
  0x27   :  { %p709_p2 = scmp.ne.s32.totalorder %s994_s0, %s708_s21  ;;  %p712_p3 = scmp.lt.u32.totalorder %s708_s21, %s994_s0 }
  0x29   :  { %p714_p4 = pnand %p712_p3, %p709_p2 }
  0x2b   :  { %717 = shalt.err (!%p714_p4)
}
  0x2c   :  { %s718_s28 = scalar_lea.vmem %s24_s26, 256  ;;  %p723_p6 = scmp.lt.s32.totalorder %s24_s26, %s24_s26 }
  0x2d   :  { %p719_p5 = scmp.ne.s32.totalorder %s24_s26, %s718_s28  ;;  %p724_p7 = scmp.lt.s32.totalorder %s718_s28, %s718_s28 }
  0x2f   :  { %p725_p8 = por %p724_p7, %p723_p6 }
  0x31   :  { %p726_p9 = pnand %p725_p8, %p719_p5 }
  0x33   :  { %729 = shalt.err (!%p726_p9)
}
  0x34   :  { %29 = dma.hbm_to_vmem [thread:$0]  %s994_s0, 256, %s24_s26, [#allocation3], %s805_s19, %s805_s19, %s806_s20  }
  0x35   :  { %s811_s29 = smov [#allocation7]   ;;  %s812_s11 = smov [#allocation10]  }
  0x36   :  { %s47_s30 = sshll.u32 %s811_s29, 4  ;;  %s77_s12 = sshll.u32 %s812_s11, 4  ;;  %s48_s30 = int_to_ptr.vmem [resolvable:$true] %s47_s30  ;;  %s78_s12 = int_to_ptr.vmem [resolvable:$true] %s77_s12 }
  0x37   :  { %s730_s15 = scalar_lea.hbm %s996_s2, 128 }
  0x38   :  { %p731_p10 = scmp.ne.s32.totalorder %s996_s2, %s730_s15  ;;  %p734_p11 = scmp.lt.u32.totalorder %s730_s15, %s996_s2 }
  0x3a   :  { %p736_p12 = pnand %p734_p11, %p731_p10 }
  0x3c   :  { %739 = shalt.err (!%p736_p12)
}
  0x3d   :  { %s740_s0 = scalar_lea.vmem %s48_s30, 128  ;;  %p745_p0 = scmp.lt.s32.totalorder %s48_s30, %s48_s30 }
  0x3e   :  { %p741_p13 = scmp.ne.s32.totalorder %s48_s30, %s740_s0  ;;  %p746_p1 = scmp.lt.s32.totalorder %s740_s0, %s740_s0 }
  0x40   :  { %p747_p2 = por %p746_p1, %p745_p0 }
  0x42   :  { %p748_p3 = pnand %p747_p2, %p741_p13 }
  0x44   :  { %751 = shalt.err (!%p748_p3)
}
  0x45   :  { %53 = dma.hbm_to_vmem [thread:$0]  %s996_s2, 128, %s48_s30, [#allocation6], %s809_s10, %s809_s10, %s810_s14  }
  0x46   :  { %s752_s27 = scalar_lea.hbm %s1001_s7, 1024 }
  0x47   :  { %p753_p4 = scmp.ne.s32.totalorder %s1001_s7, %s752_s27  ;;  %p756_p5 = scmp.lt.u32.totalorder %s752_s27, %s1001_s7 }
  0x49   :  { %p758_p6 = pnand %p756_p5, %p753_p4 }
  0x4b   :  { %761 = shalt.err (!%p758_p6)
}
  0x4c   :  { %s762_s11 = scalar_lea.vmem %s78_s12, 1024  ;;  %p767_p8 = scmp.lt.s32.totalorder %s78_s12, %s78_s12 }
  0x4d   :  { %p763_p7 = scmp.ne.s32.totalorder %s78_s12, %s762_s11  ;;  %p768_p9 = scmp.lt.s32.totalorder %s762_s11, %s762_s11 }
  0x4f   :  { %p769_p10 = por %p768_p9, %p767_p8 }
  0x51   :  { %p770_p11 = pnand %p769_p10, %p763_p7 }
  0x53   :  { %773 = shalt.err (!%p770_p11)
}
  0x54   :  { %83 = dma.hbm_to_vmem [thread:$0]  %s1001_s7, 1024, %s78_s12, [#allocation9], %s809_s10, %s809_s10, %s810_s14  }
  0x55   :  { %796 = dma.done.wait [#allocation3], 256  }
  0x56   :  { %797 = vsyncadd [#allocation3], 4294967040 }
  0x57   :  { %798 = dma.done.wait [#allocation6], 384  }
  0x58   :  { %799 = vsyncadd [#allocation6], 4294966912 }
  0x59   :  { %800 = dma.done.wait [#allocation9], 2048  }
  0x5a   :  { %801 = vsyncadd [#allocation9], 4294965248  ;;  %v813_v0 = vmov 0.0   ;;  %vm814_vm0 = vmmov 0   ;;  %v630_v1 = vld [vmem:[%s997_s3] sm:$0xff]   ;;  %v105_v3 = vld [vmem:[#allocation5] sm:$0xff] }
  0x5b   :  { %566 = vmatprep.subr.bf16.mxu0 %v813_v0  ;;  %572 = vmatprep.subr.bf16.mxu1 %v813_v0  ;;  %v631_v2 = vld [vmem:[#allocation7] sm:$0xff]   ;;  %v106_v4 = vld [vmem:[#allocation5 + $0x8] sm:$0xff]  ;;  %vm118_vm1 = vcmask 130048   ;;  %v103_v7 = vld [vmem:[#allocation2 + $0x8] sm:$0xff] }
  0x5c   :  { %568 = vmatprep.mubr.msk.bf16.mxu0 %vm814_vm0, %v813_v0  ;;  %574 = vmatprep.mubr.msk.bf16.mxu1 %vm814_vm0, %v813_v0  ;;  %v102_v5 = vld [vmem:[#allocation2] sm:$0xff]  ;;  %v107_v6 = vpack.c.bf16 %v106_v4, %v105_v3  ;;  %v632_v9 = vld [vmem:[#allocation8] sm:$0xff]   ;;  %v633_v10 = vld [vmem:[#allocation8 + $0x8] sm:$0xff]  }
  0x5d   :  { %567 = vmatpush3.bf16.msra.mxu0 %v630_v1  ;;  %573 = vmatpush3.bf16.msra.mxu1 %v631_v2  ;;  %v104_v8 = vpack.c.bf16 %v103_v7, %v102_v5  ;;  %v634_v11 = vld [vmem:[#allocation8 + $0x10] sm:$0xff]   ;;  %v635_v12 = vld [vmem:[#allocation8 + $0x18] sm:$0xff]   ;;  %v636_v13 = vld [vmem:[#allocation8 + $0x20] sm:$0xff]  }
  0x5e   :  { %578 = vmatprep.subr.bf16.mxu0 %v813_v0  ;;  %598 = vmatprep.subr.bf16.mxu1 %v813_v0  ;;  %v637_v14 = vld [vmem:[#allocation8 + $0x28] sm:$0xff]   ;;  %v638_v15 = vld [vmem:[#allocation8 + $0x30] sm:$0xff]   ;;  %v639_v16 = vld [vmem:[#allocation8 + $0x38] sm:$0xff]  }
  0x5f   :  { %v640_v17 = vld [vmem:[#allocation10] sm:$0xff]   ;;  %v641_v18 = vld [vmem:[#allocation10 + $0x8] sm:$0xff]   ;;  %v642_v19 = vld [vmem:[#allocation10 + $0x10] sm:$0xff]  }
  0x60   :  { %569 = vmatmul.mubr.msk.bf16.vlgmr.msra.gmra.mrb[0].mxu0 %vm118_vm1, %v107_v6  ;;  %575 = vmatmul.mubr.msk.bf16.vlgmr.msra.gmra.mrb[0].mxu1 %vm118_vm1, %v104_v8  ;;  %v643_v20 = vld [vmem:[#allocation10 + $0x18] sm:$0xff]   ;;  %v644_v21 = vld [vmem:[#allocation10 + $0x20] sm:$0xff]   ;;  %v645_v22 = vld [vmem:[#allocation10 + $0x28] sm:$0xff]  }
  0x61   :  { %579 = vmatpush3.bf16.msra.mxu0 %v632_v9  ;;  %594 = vmatprep.mubr.msk.bf16.mxu0 %vm814_vm0, %v813_v0  ;;  %v525_v25 = vld [vmem:[%s998_s4] ss:$0 sm:$0xff]  ;;  %v646_v39 = vld [vmem:[#allocation10 + $0x30] sm:$0xff]  }
  0x62   :  { %580 = vmatprep.subr.bf16.mxu0 %v813_v0  ;;  %614 = vmatprep.mubr.msk.bf16.mxu1 %vm814_vm0, %v813_v0  ;;  %v647_v40 = vld [vmem:[#allocation10 + $0x38] sm:$0xff]  }
  0x63   :  { %599 = vmatpush3.bf16.msra.mxu1 %v640_v17  ;;  %v526_v41 = vld [vmem:[%s1000_s6] ss:$0 sm:$0xff]  ;;  %s815_s6 = smov [#allocation11]  }
  0x64   :  { %600 = vmatprep.subr.bf16.mxu1 %v813_v0  ;;  %v535_v51 = vld [vmem:[%s1002_s8] ss:$0 sm:$0xff]  ;;  %s507_s8 = sshll.u32 %s815_s6, 4  ;;  %s508_s8 = int_to_ptr.vmem [resolvable:$true] %s507_s8 }
  0x65   :  { %581 = vmatpush3.bf16.msra.mxu0 %v633_v10  ;;  %s774_s15 = scalar_lea.vmem %s508_s8, 256  ;;  %p779_p13 = scmp.lt.s32.totalorder %s508_s8, %s508_s8 }
  0x66   :  { %582 = vmatprep.subr.bf16.mxu0 %v813_v0  ;;  %p775_p12 = scmp.ne.s32.totalorder %s508_s8, %s774_s15  ;;  %p780_p0 = scmp.lt.s32.totalorder %s774_s15, %s774_s15 }
  0x67   :  { %601 = vmatpush3.bf16.msra.mxu1 %v641_v18 }
  0x68   :  { %602 = vmatprep.subr.bf16.mxu1 %v813_v0  ;;  %p781_p1 = por %p780_p0, %p779_p13 }
  0x69   :  { %583 = vmatpush3.bf16.msra.mxu0 %v634_v11 }
  0x6a   :  { %584 = vmatprep.subr.bf16.mxu0 %v813_v0  ;;  %p782_p2 = pnand %p781_p1, %p775_p12 }
  0x6b   :  { %603 = vmatpush3.bf16.msra.mxu1 %v642_v19 }
  0x6c   :  { %604 = vmatprep.subr.bf16.mxu1 %v813_v0 }
  0x6d   :  { %585 = vmatpush3.bf16.msra.mxu0 %v635_v12 }
  0x6e   :  { %586 = vmatprep.subr.bf16.mxu0 %v813_v0 }
  0x6f   :  { %605 = vmatpush3.bf16.msra.mxu1 %v643_v20 }
  0x70   :  { %606 = vmatprep.subr.bf16.mxu1 %v813_v0 }
  0x71   :  { %587 = vmatpush3.bf16.msra.mxu0 %v636_v13 }
  0x72   :  { %588 = vmatprep.subr.bf16.mxu0 %v813_v0 }
  0x73   :  { %607 = vmatpush3.bf16.msra.mxu1 %v644_v21 }
  0x74   :  { %608 = vmatprep.subr.bf16.mxu1 %v813_v0 }
  0x75   :  { %589 = vmatpush3.bf16.msra.mxu0 %v637_v14 }
  0x76   :  { %590 = vmatprep.subr.bf16.mxu0 %v813_v0 }
  0x77   :  { %609 = vmatpush3.bf16.msra.mxu1 %v645_v22  ;;  %v492_v22 = vlaneseq }
  0x78   :  { %610 = vmatprep.subr.bf16.mxu1 %v813_v0 }
  0x79   :  { %591 = vmatpush3.bf16.msra.mxu0 %v638_v15 }
  0x7a   :  { %592 = vmatprep.subr.bf16.mxu0 %v813_v0 }
  0x7b   :  { %611 = vmatpush3.bf16.msra.mxu1 %v646_v39 }
  0x7c   :  { %612 = vmatprep.subr.bf16.mxu1 %v813_v0 }
  0x7d   :  { %593 = vmatpush3.bf16.msra.mxu0 %v639_v16 }
  0x7f   :  { %613 = vmatpush3.bf16.msra.mxu1 %v647_v40 }
 0x133   :  { %v156_v23 = vpop.f32.mrb[0].mxu0  ;;  %v206_v24 = vpop.f32.mrb[0].mxu1 }
 0x134   :  { %v570_v26 = vpop.f32.mrb[1].mxu0  ;;  %v207_v27 = vadd.f32 %v206_v24, %v156_v23  ;;  %v576_v28 = vpop.f32.mrb[1].mxu1  ;;  %v493_v24 = vand.u32 127, %v492_v22 }
 0x135   :  { %v159_v29 = vpop.f32.mrb[2].mxu0  ;;  %v209_v30 = vpop.f32.mrb[2].mxu1 }
 0x136   :  { %v571_v31 = vpop.f32.mrb[3].mxu0  ;;  %v220_v32 = vadd.f32 %v525_v25, %v207_v27  ;;  %v210_v33 = vadd.f32 %v209_v30, %v159_v29  ;;  %v577_v34 = vpop.f32.mrb[3].mxu1  ;;  %vm495_vm4 = vcmp.lt.s32.totalorder %v493_v24, 8  ;;  %vm494_vm5 = vcmp.lt.s32.totalorder %v493_v24, 4 }
 0x138   :  { %v221_v35 = vadd.f32 %v525_v25, %v210_v33  ;;  %v222_v36 = vmax.f32 %v220_v32, 0.0 }
 0x13a   :  { %v223_v37 = vmax.f32 %v221_v35, 0.0 }
 0x13c   :  { %v224_v38 = vpack.c.bf16 %v223_v37, %v222_v36 }
 0x13e   :  { %595 = vmatmul.mubr.bf16.vlgmr.msra.gmra.mrb[4].mxu0 %v224_v38 }
 0x211   :  { %v330_v42 = vpop.f32.mrb[4].mxu0 }
 0x212   :  { %v331_v43 = vadd.f32 %v526_v41, %v330_v42  ;;  %v596_v44 = vpop.f32.mrb[5].mxu0 }
 0x213   :  { %v333_v45 = vpop.f32.mrb[6].mxu0 }
 0x214   :  { %v334_v46 = vadd.f32 %v526_v41, %v333_v45  ;;  %v597_v47 = vpop.f32.mrb[7].mxu0  ;;  %v337_v48 = vmax.f32 %v331_v43, 0.0 }
 0x216   :  { %v338_v49 = vmax.f32 %v334_v46, 0.0 }
 0x218   :  { %v339_v50 = vpack.c.bf16 %v338_v49, %v337_v48 }
 0x21a   :  { %615 = vmatmul.mubr.bf16.vlgmr.msra.gmra.mrb[4].mxu1 %v339_v50 }
 0x2ed   :  { %v445_v52 = vpop.f32.mrb[4].mxu1 }
 0x2ee   :  { %v446_v53 = vadd.f32 %v535_v51, %v445_v52  ;;  %v616_v54 = vpop.f32.mrb[5].mxu1 }
 0x2ef   :  { %v448_v55 = vpop.f32.mrb[6].mxu1 }
 0x2f0   :  { %v456_v56 = vand.u32 2147483647, %v446_v53  ;;  %v449_v57 = vadd.f32 %v535_v51, %v448_v55  ;;  %v617_v58 = vpop.f32.mrb[7].mxu1  ;;  %v454_v14 = vmax.f32 %v446_v53, 0.0 }
 0x2f2   :  { %v458_v59 = vsub.f32 0.0, %v456_v56  ;;  %v457_v60 = vand.u32 2147483647, %v449_v57  ;;  %v455_v19 = vmax.f32 %v449_v57, 0.0 }
 0x2f4   :  { %v460_v61 = vmul.f32 1.442695, %v458_v59  ;;  %v459_v62 = vsub.f32 0.0, %v457_v60 }
 0x2f6   :  { %648 = vpow2.f32 %v460_v61  ;;  %v462_v63 = vmul.f32 1.442695, %v459_v62 }
 0x2f8   :  { %650 = vpow2.f32 %v462_v63 }
 0x300   :  { %v649_v0 = vpop.eup %648 }
 0x301   :  { %v464_v1 = vadd.f32 1.0, %v649_v0  ;;  %v467_v4 = vmul.f32 -0.5, %v649_v0  ;;  %v470_v7 = vand.u32 2147483647, %v649_v0 }
 0x302   :  { %v651_v2 = vpop.eup %650 }
 0x303   :  { %652 = vlog2.f32 %v464_v1  ;;  %v473_v3 = vadd.f32 1.0, %v651_v2  ;;  %v476_v5 = vmul.f32 -0.5, %v651_v2  ;;  %v468_v6 = vadd.f32 1.0, %v467_v4 }
 0x304   :  { %v479_v10 = vand.u32 2147483647, %v651_v2  ;;  %vm471_vm2 = vcmp.lt.f32.partialorder %v470_v7, 0.0004427343 }
 0x305   :  { %654 = vlog2.f32 %v473_v3  ;;  %v477_v8 = vadd.f32 1.0, %v476_v5  ;;  %v469_v12 = vmul.f32 %v649_v0, %v468_v6 }
 0x306   :  { %vm480_vm3 = vcmp.lt.f32.partialorder %v479_v10, 0.0004427343 }
 0x307   :  { %v478_v17 = vmul.f32 %v651_v2, %v477_v8 }
 0x30d   :  { %v653_v9 = vpop.eup %652 }
 0x30e   :  { %v466_v11 = vmul.f32 0.6931472, %v653_v9 }
 0x30f   :  { %v655_v13 = vpop.eup %654 }
 0x310   :  { %v472_v15 = vsel %vm471_vm2, %v469_v12, %v466_v11  ;;  %v475_v16 = vmul.f32 0.6931472, %v655_v13 }
 0x311   :  { %v482_v18 = vadd.f32 %v472_v15, %v454_v14 }
 0x312   :  { %v481_v20 = vsel %vm480_vm3, %v478_v17, %v475_v16 }
 0x313   :  { %656 = vlog2.f32 %v482_v18  ;;  %v483_v21 = vadd.f32 %v481_v20, %v455_v19 }
 0x315   :  { %658 = vlog2.f32 %v483_v21 }
 0x316   :  { %660 = vtanh.f32 %v446_v53 }
 0x317   :  { %662 = vtanh.f32 %v449_v57 }
 0x31d   :  { %v657_v23 = vpop.eup %656 }
 0x31e   :  { %v485_v25 = vmul.f32 0.6931472, %v657_v23 }
 0x31f   :  { %v659_v26 = vpop.eup %658 }
 0x320   :  { %v487_v27 = vmul.f32 0.6931472, %v659_v26  ;;  %v488_v28 = vadd.f32 1.837877, %v485_v25  ;;  %v661_v31 = vpop.eup %660 }
 0x321   :  { %v663_v35 = vpop.eup %662 }
 0x322   :  { %v489_v29 = vadd.f32 1.837877, %v487_v27  ;;  %v490_v30 = vmul.f32 -0.5, %v488_v28 }
 0x324   :  { %v491_v32 = vmul.f32 -0.5, %v489_v29  ;;  %v496_v33 = vsel %vm495_vm4, %v490_v30, %v482_v18 }
 0x325   :  { %v498_v34 = vsel %vm494_vm5, %v661_v31, %v496_v33 }
 0x326   :  { %v497_v36 = vsel %vm495_vm4, %v491_v32, %v483_v21  ;;  %500 = vst [vmem:[#allocation11] sm:$0xff] %v498_v34 }
 0x327   :  { %v499_v37 = vsel %vm494_vm5, %v663_v35, %v497_v36 }
 0x328   :  { %501 = vst [vmem:[#allocation11 + $0x8] sm:$0xff] %v499_v37 }
 0x329   :  { %785 = shalt.err (!%p782_p2)
}
 0x32a   :  { %s786_s18 = scalar_lea.hbm %s1003_s9, 256 }
 0x32b   :  { %p787_p3 = scmp.ne.s32.totalorder %s1003_s9, %s786_s18  ;;  %p790_p4 = scmp.lt.u32.totalorder %s786_s18, %s1003_s9 }
 0x32d   :  { %p792_p5 = pnand %p790_p4, %p787_p3 }
 0x32f   :  { %795 = shalt.err (!%p792_p5)
}
 0x330   :  { %513 = dma.vmem_to_hbm [thread:$0]  %s508_s8, 256, %s1003_s9, [#allocation4], %s805_s19, %s805_s19, %s806_s20  }
 0x331   :  { %802 = dma.done.wait [#allocation4], 256  }
 0x332   :  { %803 = vsyncadd [#allocation4], 4294967040 }
 0x333   :  { %517 = vsyncpa [#allocation3], 1 }
 0x334   :  { %518 = vsyncpa [#allocation6], 1 }
 0x335   :  { %519 = vsyncpa [#allocation9], 1 }
 0x336   :  { %520 = vsyncpa [#allocation4], 1 }

// kernel: _actor_call.1
= control target key start
LH: loop header
LB: loop body
LE: loop exit
PB: predicated region body
PF: predicated region fallthrough
CT: control target
= control target key end

     0   :  { %14 = vsyncpa [#allocation3], 0  ;;  %s994_s0 = inlined_call_operand.hbm [shape: f32[16,16], index: 0, kind: input, shape index: {}]   ;;  %s995_s1 = inlined_call_operand.hbm [shape: f32[16,16], index: 1, kind: input, shape index: {}]   ;;  %s996_s2 = inlined_call_operand.hbm [shape: bf16[16,128], index: 2, kind: input, shape index: {}]   ;;  %s997_s3 = inlined_call_operand.vmem [shape: bf16[16,128], index: 3, kind: input, shape index: {}]   ;;  %s998_s4 = inlined_call_operand.vmem [shape: f32[1,128], index: 4, kind: input, shape index: {}]   ;;  %s999_s5 = inlined_call_operand.hbm [shape: bf16[128,128], index: 5, kind: input, shape index: {}]   ;;  %s1000_s6 = inlined_call_operand.vmem [shape: f32[1,128], index: 6, kind: input, shape index: {}]   ;;  %s1001_s7 = inlined_call_operand.hbm [shape: bf16[128,128], index: 7, kind: input, shape index: {}]   ;;  %s1002_s8 = inlined_call_operand.vmem [shape: f32[1,128], index: 8, kind: input, shape index: {}]   ;;  %s1003_s9 = inlined_call_operand.hbm [shape: f32[16,128], index: 9, kind: output, shape index: {}]  }
   0x1   :  { %15 = vsyncpa [#allocation6], 0 }
   0x2   :  { %16 = vsyncpa [#allocation9], 0 }
   0x3   :  { %17 = vsyncpa [#allocation4], 0  ;;  %s804_s30 = smov [#allocation5]   ;;  %s664_s13 = scalar_lea.hbm %s995_s1, 256 }
   0x4   :  { %s35_s10 = sshll.u32 %s804_s30, 4  ;;  %p665_p0 = scmp.ne.s32.totalorder %s995_s1, %s664_s13  ;;  %s36_s10 = int_to_ptr.vmem [resolvable:$true] %s35_s10 }
   0x5   :  { %p668_p1 = scmp.lt.u32.totalorder %s664_s13, %s995_s1 }
   0x7   :  { %p670_p2 = pnand %p668_p1, %p665_p0 }
   0x9   :  { %673 = shalt.err (!%p670_p2)
}
   0xa   :  { %s674_s18 = scalar_lea.vmem %s36_s10, 256  ;;  %p679_p4 = scmp.lt.s32.totalorder %s36_s10, %s36_s10 }
   0xb   :  { %p675_p3 = scmp.ne.s32.totalorder %s36_s10, %s674_s18  ;;  %p680_p5 = scmp.lt.s32.totalorder %s674_s18, %s674_s18 }
   0xd   :  { %p681_p6 = por %p680_p5, %p679_p4 }
   0xf   :  { %p682_p7 = pnand %p681_p6, %p675_p3 }
  0x11   :  { %685 = shalt.err (!%p682_p7)
}
  0x12   :  { %s805_s19 = smov 128   ;;  %s806_s20 = smov 8  }
  0x13   :  { %41 = dma.hbm_to_vmem [thread:$0]  %s995_s1, 256, %s36_s10, [#allocation6], %s805_s19, %s805_s19, %s806_s20  }
  0x14   :  { %s807_s23 = smov [#allocation8]   ;;  %s808_s25 = smov [#allocation2]  }
  0x15   :  { %s63_s24 = sshll.u32 %s807_s23, 4  ;;  %s23_s26 = sshll.u32 %s808_s25, 4  ;;  %s64_s24 = int_to_ptr.vmem [resolvable:$true] %s63_s24  ;;  %s24_s26 = int_to_ptr.vmem [resolvable:$true] %s23_s26 }
  0x16   :  { %s686_s29 = scalar_lea.hbm %s999_s5, 1024 }
  0x17   :  { %p687_p8 = scmp.ne.s32.totalorder %s999_s5, %s686_s29  ;;  %p690_p9 = scmp.lt.u32.totalorder %s686_s29, %s999_s5 }
  0x19   :  { %p692_p10 = pnand %p690_p9, %p687_p8 }
  0x1b   :  { %695 = shalt.err (!%p692_p10)
}
  0x1c   :  { %s696_s1 = scalar_lea.vmem %s64_s24, 1024  ;;  %p701_p12 = scmp.lt.s32.totalorder %s64_s24, %s64_s24 }
  0x1d   :  { %p697_p11 = scmp.ne.s32.totalorder %s64_s24, %s696_s1  ;;  %p702_p13 = scmp.lt.s32.totalorder %s696_s1, %s696_s1 }
  0x1f   :  { %p703_p0 = por %p702_p13, %p701_p12 }
  0x21   :  { %p704_p1 = pnand %p703_p0, %p697_p11 }
  0x23   :  { %707 = shalt.err (!%p704_p1)
}
  0x24   :  { %s809_s10 = smov 64   ;;  %s810_s14 = smov 4  }
  0x25   :  { %69 = dma.hbm_to_vmem [thread:$0]  %s999_s5, 1024, %s64_s24, [#allocation9], %s809_s10, %s809_s10, %s810_s14  }
  0x26   :  { %s708_s21 = scalar_lea.hbm %s994_s0, 256 }
  0x27   :  { %p709_p2 = scmp.ne.s32.totalorder %s994_s0, %s708_s21  ;;  %p712_p3 = scmp.lt.u32.totalorder %s708_s21, %s994_s0 }
  0x29   :  { %p714_p4 = pnand %p712_p3, %p709_p2 }
  0x2b   :  { %717 = shalt.err (!%p714_p4)
}
  0x2c   :  { %s718_s28 = scalar_lea.vmem %s24_s26, 256  ;;  %p723_p6 = scmp.lt.s32.totalorder %s24_s26, %s24_s26 }
  0x2d   :  { %p719_p5 = scmp.ne.s32.totalorder %s24_s26, %s718_s28  ;;  %p724_p7 = scmp.lt.s32.totalorder %s718_s28, %s718_s28 }
  0x2f   :  { %p725_p8 = por %p724_p7, %p723_p6 }
  0x31   :  { %p726_p9 = pnand %p725_p8, %p719_p5 }
  0x33   :  { %729 = shalt.err (!%p726_p9)
}
  0x34   :  { %29 = dma.hbm_to_vmem [thread:$0]  %s994_s0, 256, %s24_s26, [#allocation3], %s805_s19, %s805_s19, %s806_s20  }
  0x35   :  { %s811_s29 = smov [#allocation7]   ;;  %s812_s11 = smov [#allocation10]  }
  0x36   :  { %s47_s30 = sshll.u32 %s811_s29, 4  ;;  %s77_s12 = sshll.u32 %s812_s11, 4  ;;  %s48_s30 = int_to_ptr.vmem [resolvable:$true] %s47_s30  ;;  %s78_s12 = int_to_ptr.vmem [resolvable:$true] %s77_s12 }
  0x37   :  { %s730_s15 = scalar_lea.hbm %s996_s2, 128 }
  0x38   :  { %p731_p10 = scmp.ne.s32.totalorder %s996_s2, %s730_s15  ;;  %p734_p11 = scmp.lt.u32.totalorder %s730_s15, %s996_s2 }
  0x3a   :  { %p736_p12 = pnand %p734_p11, %p731_p10 }
  0x3c   :  { %739 = shalt.err (!%p736_p12)
}
  0x3d   :  { %s740_s0 = scalar_lea.vmem %s48_s30, 128  ;;  %p745_p0 = scmp.lt.s32.totalorder %s48_s30, %s48_s30 }
  0x3e   :  { %p741_p13 = scmp.ne.s32.totalorder %s48_s30, %s740_s0  ;;  %p746_p1 = scmp.lt.s32.totalorder %s740_s0, %s740_s0 }
  0x40   :  { %p747_p2 = por %p746_p1, %p745_p0 }
  0x42   :  { %p748_p3 = pnand %p747_p2, %p741_p13 }
  0x44   :  { %751 = shalt.err (!%p748_p3)
}
  0x45   :  { %53 = dma.hbm_to_vmem [thread:$0]  %s996_s2, 128, %s48_s30, [#allocation6], %s809_s10, %s809_s10, %s810_s14  }
  0x46   :  { %s752_s27 = scalar_lea.hbm %s1001_s7, 1024 }
  0x47   :  { %p753_p4 = scmp.ne.s32.totalorder %s1001_s7, %s752_s27  ;;  %p756_p5 = scmp.lt.u32.totalorder %s752_s27, %s1001_s7 }
  0x49   :  { %p758_p6 = pnand %p756_p5, %p753_p4 }
  0x4b   :  { %761 = shalt.err (!%p758_p6)
}
  0x4c   :  { %s762_s11 = scalar_lea.vmem %s78_s12, 1024  ;;  %p767_p8 = scmp.lt.s32.totalorder %s78_s12, %s78_s12 }
  0x4d   :  { %p763_p7 = scmp.ne.s32.totalorder %s78_s12, %s762_s11  ;;  %p768_p9 = scmp.lt.s32.totalorder %s762_s11, %s762_s11 }
  0x4f   :  { %p769_p10 = por %p768_p9, %p767_p8 }
  0x51   :  { %p770_p11 = pnand %p769_p10, %p763_p7 }
  0x53   :  { %773 = shalt.err (!%p770_p11)
}
  0x54   :  { %83 = dma.hbm_to_vmem [thread:$0]  %s1001_s7, 1024, %s78_s12, [#allocation9], %s809_s10, %s809_s10, %s810_s14  }
  0x55   :  { %796 = dma.done.wait [#allocation3], 256  }
  0x56   :  { %797 = vsyncadd [#allocation3], 4294967040 }
  0x57   :  { %798 = dma.done.wait [#allocation6], 384  }
  0x58   :  { %799 = vsyncadd [#allocation6], 4294966912 }
  0x59   :  { %800 = dma.done.wait [#allocation9], 2048  }
  0x5a   :  { %801 = vsyncadd [#allocation9], 4294965248  ;;  %v813_v0 = vmov 0.0   ;;  %vm814_vm0 = vmmov 0   ;;  %v630_v1 = vld [vmem:[%s997_s3] sm:$0xff]   ;;  %v105_v3 = vld [vmem:[#allocation5] sm:$0xff] }
  0x5b   :  { %566 = vmatprep.subr.bf16.mxu0 %v813_v0  ;;  %572 = vmatprep.subr.bf16.mxu1 %v813_v0  ;;  %v631_v2 = vld [vmem:[#allocation7] sm:$0xff]   ;;  %v106_v4 = vld [vmem:[#allocation5 + $0x8] sm:$0xff]  ;;  %vm118_vm1 = vcmask 130048   ;;  %v103_v7 = vld [vmem:[#allocation2 + $0x8] sm:$0xff] }
  0x5c   :  { %568 = vmatprep.mubr.msk.bf16.mxu0 %vm814_vm0, %v813_v0  ;;  %574 = vmatprep.mubr.msk.bf16.mxu1 %vm814_vm0, %v813_v0  ;;  %v102_v5 = vld [vmem:[#allocation2] sm:$0xff]  ;;  %v107_v6 = vpack.c.bf16 %v106_v4, %v105_v3  ;;  %v632_v9 = vld [vmem:[#allocation8] sm:$0xff]   ;;  %v633_v10 = vld [vmem:[#allocation8 + $0x8] sm:$0xff]  }
  0x5d   :  { %567 = vmatpush3.bf16.msra.mxu0 %v630_v1  ;;  %573 = vmatpush3.bf16.msra.mxu1 %v631_v2  ;;  %v104_v8 = vpack.c.bf16 %v103_v7, %v102_v5  ;;  %v634_v11 = vld [vmem:[#allocation8 + $0x10] sm:$0xff]   ;;  %v635_v12 = vld [vmem:[#allocation8 + $0x18] sm:$0xff]   ;;  %v636_v13 = vld [vmem:[#allocation8 + $0x20] sm:$0xff]  }
  0x5e   :  { %578 = vmatprep.subr.bf16.mxu0 %v813_v0  ;;  %598 = vmatprep.subr.bf16.mxu1 %v813_v0  ;;  %v637_v14 = vld [vmem:[#allocation8 + $0x28] sm:$0xff]   ;;  %v638_v15 = vld [vmem:[#allocation8 + $0x30] sm:$0xff]   ;;  %v639_v16 = vld [vmem:[#allocation8 + $0x38] sm:$0xff]  }
  0x5f   :  { %v640_v17 = vld [vmem:[#allocation10] sm:$0xff]   ;;  %v641_v18 = vld [vmem:[#allocation10 + $0x8] sm:$0xff]   ;;  %v642_v19 = vld [vmem:[#allocation10 + $0x10] sm:$0xff]  }
  0x60   :  { %569 = vmatmul.mubr.msk.bf16.vlgmr.msra.gmra.mrb[0].mxu0 %vm118_vm1, %v107_v6  ;;  %575 = vmatmul.mubr.msk.bf16.vlgmr.msra.gmra.mrb[0].mxu1 %vm118_vm1, %v104_v8  ;;  %v643_v20 = vld [vmem:[#allocation10 + $0x18] sm:$0xff]   ;;  %v644_v21 = vld [vmem:[#allocation10 + $0x20] sm:$0xff]   ;;  %v645_v22 = vld [vmem:[#allocation10 + $0x28] sm:$0xff]  }
  0x61   :  { %579 = vmatpush3.bf16.msra.mxu0 %v632_v9  ;;  %594 = vmatprep.mubr.msk.bf16.mxu0 %vm814_vm0, %v813_v0  ;;  %v525_v25 = vld [vmem:[%s998_s4] ss:$0 sm:$0xff]  ;;  %v646_v39 = vld [vmem:[#allocation10 + $0x30] sm:$0xff]  }
  0x62   :  { %580 = vmatprep.subr.bf16.mxu0 %v813_v0  ;;  %614 = vmatprep.mubr.msk.bf16.mxu1 %vm814_vm0, %v813_v0  ;;  %v647_v40 = vld [vmem:[#allocation10 + $0x38] sm:$0xff]  }
  0x63   :  { %599 = vmatpush3.bf16.msra.mxu1 %v640_v17  ;;  %v526_v41 = vld [vmem:[%s1000_s6] ss:$0 sm:$0xff]  ;;  %s815_s6 = smov [#allocation11]  }
  0x64   :  { %600 = vmatprep.subr.bf16.mxu1 %v813_v0  ;;  %v535_v51 = vld [vmem:[%s1002_s8] ss:$0 sm:$0xff]  ;;  %s507_s8 = sshll.u32 %s815_s6, 4  ;;  %s508_s8 = int_to_ptr.vmem [resolvable:$true] %s507_s8 }
  0x65   :  { %581 = vmatpush3.bf16.msra.mxu0 %v633_v10  ;;  %s774_s15 = scalar_lea.vmem %s508_s8, 256  ;;  %p779_p13 = scmp.lt.s32.totalorder %s508_s8, %s508_s8 }
  0x66   :  { %582 = vmatprep.subr.bf16.mxu0 %v813_v0  ;;  %p775_p12 = scmp.ne.s32.totalorder %s508_s8, %s774_s15  ;;  %p780_p0 = scmp.lt.s32.totalorder %s774_s15, %s774_s15 }
  0x67   :  { %601 = vmatpush3.bf16.msra.mxu1 %v641_v18 }
  0x68   :  { %602 = vmatprep.subr.bf16.mxu1 %v813_v0  ;;  %p781_p1 = por %p780_p0, %p779_p13 }
  0x69   :  { %583 = vmatpush3.bf16.msra.mxu0 %v634_v11 }
  0x6a   :  { %584 = vmatprep.subr.bf16.mxu0 %v813_v0  ;;  %p782_p2 = pnand %p781_p1, %p775_p12 }
  0x6b   :  { %603 = vmatpush3.bf16.msra.mxu1 %v642_v19 }
  0x6c   :  { %604 = vmatprep.subr.bf16.mxu1 %v813_v0 }
  0x6d   :  { %585 = vmatpush3.bf16.msra.mxu0 %v635_v12 }
  0x6e   :  { %586 = vmatprep.subr.bf16.mxu0 %v813_v0 }
  0x6f   :  { %605 = vmatpush3.bf16.msra.mxu1 %v643_v20 }
  0x70   :  { %606 = vmatprep.subr.bf16.mxu1 %v813_v0 }
  0x71   :  { %587 = vmatpush3.bf16.msra.mxu0 %v636_v13 }
  0x72   :  { %588 = vmatprep.subr.bf16.mxu0 %v813_v0 }
  0x73   :  { %607 = vmatpush3.bf16.msra.mxu1 %v644_v21 }
  0x74   :  { %608 = vmatprep.subr.bf16.mxu1 %v813_v0 }
  0x75   :  { %589 = vmatpush3.bf16.msra.mxu0 %v637_v14 }
  0x76   :  { %590 = vmatprep.subr.bf16.mxu0 %v813_v0 }
  0x77   :  { %609 = vmatpush3.bf16.msra.mxu1 %v645_v22  ;;  %v492_v22 = vlaneseq }
  0x78   :  { %610 = vmatprep.subr.bf16.mxu1 %v813_v0 }
  0x79   :  { %591 = vmatpush3.bf16.msra.mxu0 %v638_v15 }
  0x7a   :  { %592 = vmatprep.subr.bf16.mxu0 %v813_v0 }
  0x7b   :  { %611 = vmatpush3.bf16.msra.mxu1 %v646_v39 }
  0x7c   :  { %612 = vmatprep.subr.bf16.mxu1 %v813_v0 }
  0x7d   :  { %593 = vmatpush3.bf16.msra.mxu0 %v639_v16 }
  0x7f   :  { %613 = vmatpush3.bf16.msra.mxu1 %v647_v40 }
 0x133   :  { %v156_v23 = vpop.f32.mrb[0].mxu0  ;;  %v206_v24 = vpop.f32.mrb[0].mxu1 }
 0x134   :  { %v570_v26 = vpop.f32.mrb[1].mxu0  ;;  %v207_v27 = vadd.f32 %v206_v24, %v156_v23  ;;  %v576_v28 = vpop.f32.mrb[1].mxu1  ;;  %v493_v24 = vand.u32 127, %v492_v22 }
 0x135   :  { %v159_v29 = vpop.f32.mrb[2].mxu0  ;;  %v209_v30 = vpop.f32.mrb[2].mxu1 }
 0x136   :  { %v571_v31 = vpop.f32.mrb[3].mxu0  ;;  %v220_v32 = vadd.f32 %v525_v25, %v207_v27  ;;  %v210_v33 = vadd.f32 %v209_v30, %v159_v29  ;;  %v577_v34 = vpop.f32.mrb[3].mxu1  ;;  %vm495_vm4 = vcmp.lt.s32.totalorder %v493_v24, 8  ;;  %vm494_vm5 = vcmp.lt.s32.totalorder %v493_v24, 4 }
 0x138   :  { %v221_v35 = vadd.f32 %v525_v25, %v210_v33  ;;  %v222_v36 = vmax.f32 %v220_v32, 0.0 }
 0x13a   :  { %v223_v37 = vmax.f32 %v221_v35, 0.0 }
 0x13c   :  { %v224_v38 = vpack.c.bf16 %v223_v37, %v222_v36 }
 0x13e   :  { %595 = vmatmul.mubr.bf16.vlgmr.msra.gmra.mrb[4].mxu0 %v224_v38 }
 0x211   :  { %v330_v42 = vpop.f32.mrb[4].mxu0 }
 0x212   :  { %v331_v43 = vadd.f32 %v526_v41, %v330_v42  ;;  %v596_v44 = vpop.f32.mrb[5].mxu0 }
 0x213   :  { %v333_v45 = vpop.f32.mrb[6].mxu0 }
 0x214   :  { %v334_v46 = vadd.f32 %v526_v41, %v333_v45  ;;  %v597_v47 = vpop.f32.mrb[7].mxu0  ;;  %v337_v48 = vmax.f32 %v331_v43, 0.0 }
 0x216   :  { %v338_v49 = vmax.f32 %v334_v46, 0.0 }
 0x218   :  { %v339_v50 = vpack.c.bf16 %v338_v49, %v337_v48 }
 0x21a   :  { %615 = vmatmul.mubr.bf16.vlgmr.msra.gmra.mrb[4].mxu1 %v339_v50 }
 0x2ed   :  { %v445_v52 = vpop.f32.mrb[4].mxu1 }
 0x2ee   :  { %v446_v53 = vadd.f32 %v535_v51, %v445_v52  ;;  %v616_v54 = vpop.f32.mrb[5].mxu1 }
 0x2ef   :  { %v448_v55 = vpop.f32.mrb[6].mxu1 }
 0x2f0   :  { %v456_v56 = vand.u32 2147483647, %v446_v53  ;;  %v449_v57 = vadd.f32 %v535_v51, %v448_v55  ;;  %v617_v58 = vpop.f32.mrb[7].mxu1  ;;  %v454_v14 = vmax.f32 %v446_v53, 0.0 }
 0x2f2   :  { %v458_v59 = vsub.f32 0.0, %v456_v56  ;;  %v457_v60 = vand.u32 2147483647, %v449_v57  ;;  %v455_v19 = vmax.f32 %v449_v57, 0.0 }
 0x2f4   :  { %v460_v61 = vmul.f32 1.442695, %v458_v59  ;;  %v459_v62 = vsub.f32 0.0, %v457_v60 }
 0x2f6   :  { %648 = vpow2.f32 %v460_v61  ;;  %v462_v63 = vmul.f32 1.442695, %v459_v62 }
 0x2f8   :  { %650 = vpow2.f32 %v462_v63 }
 0x300   :  { %v649_v0 = vpop.eup %648 }
 0x301   :  { %v464_v1 = vadd.f32 1.0, %v649_v0  ;;  %v467_v4 = vmul.f32 -0.5, %v649_v0  ;;  %v470_v7 = vand.u32 2147483647, %v649_v0 }
 0x302   :  { %v651_v2 = vpop.eup %650 }
 0x303   :  { %652 = vlog2.f32 %v464_v1  ;;  %v473_v3 = vadd.f32 1.0, %v651_v2  ;;  %v476_v5 = vmul.f32 -0.5, %v651_v2  ;;  %v468_v6 = vadd.f32 1.0, %v467_v4 }
 0x304   :  { %v479_v10 = vand.u32 2147483647, %v651_v2  ;;  %vm471_vm2 = vcmp.lt.f32.partialorder %v470_v7, 0.0004427343 }
 0x305   :  { %654 = vlog2.f32 %v473_v3  ;;  %v477_v8 = vadd.f32 1.0, %v476_v5  ;;  %v469_v12 = vmul.f32 %v649_v0, %v468_v6 }
 0x306   :  { %vm480_vm3 = vcmp.lt.f32.partialorder %v479_v10, 0.0004427343 }
 0x307   :  { %v478_v17 = vmul.f32 %v651_v2, %v477_v8 }
 0x30d   :  { %v653_v9 = vpop.eup %652 }
 0x30e   :  { %v466_v11 = vmul.f32 0.6931472, %v653_v9 }
 0x30f   :  { %v655_v13 = vpop.eup %654 }
 0x310   :  { %v472_v15 = vsel %vm471_vm2, %v469_v12, %v466_v11  ;;  %v475_v16 = vmul.f32 0.6931472, %v655_v13 }
 0x311   :  { %v482_v18 = vadd.f32 %v472_v15, %v454_v14 }
 0x312   :  { %v481_v20 = vsel %vm480_vm3, %v478_v17, %v475_v16 }
 0x313   :  { %656 = vlog2.f32 %v482_v18  ;;  %v483_v21 = vadd.f32 %v481_v20, %v455_v19 }
 0x315   :  { %658 = vlog2.f32 %v483_v21 }
 0x316   :  { %660 = vtanh.f32 %v446_v53 }
 0x317   :  { %662 = vtanh.f32 %v449_v57 }
 0x31d   :  { %v657_v23 = vpop.eup %656 }
 0x31e   :  { %v485_v25 = vmul.f32 0.6931472, %v657_v23 }
 0x31f   :  { %v659_v26 = vpop.eup %658 }
 0x320   :  { %v487_v27 = vmul.f32 0.6931472, %v659_v26  ;;  %v488_v28 = vadd.f32 1.837877, %v485_v25  ;;  %v661_v31 = vpop.eup %660 }
 0x321   :  { %v663_v35 = vpop.eup %662 }
 0x322   :  { %v489_v29 = vadd.f32 1.837877, %v487_v27  ;;  %v490_v30 = vmul.f32 -0.5, %v488_v28 }
 0x324   :  { %v491_v32 = vmul.f32 -0.5, %v489_v29  ;;  %v496_v33 = vsel %vm495_vm4, %v490_v30, %v482_v18 }
 0x325   :  { %v498_v34 = vsel %vm494_vm5, %v661_v31, %v496_v33 }
 0x326   :  { %v497_v36 = vsel %vm495_vm4, %v491_v32, %v483_v21  ;;  %500 = vst [vmem:[#allocation11] sm:$0xff] %v498_v34 }
 0x327   :  { %v499_v37 = vsel %vm494_vm5, %v663_v35, %v497_v36 }
 0x328   :  { %501 = vst [vmem:[#allocation11 + $0x8] sm:$0xff] %v499_v37 }
 0x329   :  { %785 = shalt.err (!%p782_p2)
}
 0x32a   :  { %s786_s18 = scalar_lea.hbm %s1003_s9, 256 }
 0x32b   :  { %p787_p3 = scmp.ne.s32.totalorder %s1003_s9, %s786_s18  ;;  %p790_p4 = scmp.lt.u32.totalorder %s786_s18, %s1003_s9 }
 0x32d   :  { %p792_p5 = pnand %p790_p4, %p787_p3 }
 0x32f   :  { %795 = shalt.err (!%p792_p5)
}
 0x330   :  { %513 = dma.vmem_to_hbm [thread:$0]  %s508_s8, 256, %s1003_s9, [#allocation4], %s805_s19, %s805_s19, %s806_s20  }
 0x331   :  { %802 = dma.done.wait [#allocation4], 256  }
 0x332   :  { %803 = vsyncadd [#allocation4], 4294967040 }
 0x333   :  { %517 = vsyncpa [#allocation3], 1 }
 0x334   :  { %518 = vsyncpa [#allocation6], 1 }
 0x335   :  { %519 = vsyncpa [#allocation9], 1 }
 0x336   :  { %520 = vsyncpa [#allocation4], 1 }

</bundles_post_ra>
